<compile_context>
chip_gen: v7x
topology: tpu7x:2x2x1
jax: 0.10.0
libtpu: 0.0.40
codegen_flags: <defaults>
</compile_context>

<pallas_src>
import functools

import jax
import jax.numpy as jnp
from jax.experimental import pallas as pl
from jax.experimental.pallas import tpu as pltpu


def _round_up(a: int, b: int) -> int:
    return (a + b - 1) // b * b


def _vmem_budget_bytes() -> int:
    """Generation-aware scoped-VMEM budget (bytes) with a conservative fallback."""
    try:
        physical = int(pltpu.get_tpu_info().vmem_capacity_bytes)
    except Exception:
        physical = 64 * 1024 * 1024  # v7x-sized fallback; safe on every generation
    # Leave headroom for Mosaic-internal scratch; cap well below 128 MiB parts.
    return min((physical * 3) // 4, 112 * 1024 * 1024)


def _conv2d_kernel(w_ref, b_ref, x_ref, y_ref, *, kh, kw, row_tile, ow_pad):
    # w_ref: (kh*kw,) f32 SMEM      b_ref: (1,) f32 SMEM
    # x_ref: (h_pad, ow_pad) whole padded input, VMEM-resident (constant block)
    # y_ref: (row_tile, ow_pad) lane-dense output tile
    r = pl.program_id(0)
    row0 = pl.multiple_of(r * row_tile, 8)  # row_tile is a multiple of 8

    # Pre-read the SMEM tap scalars once; fold the bias into the acc init.
    taps = [w_ref[t] for t in range(kh * kw)]
    acc = jnp.full((row_tile, ow_pad), b_ref[0], dtype=jnp.float32)

    # One lane-aligned load per kernel row; column offsets j>0 via XLU rolls.
    # ow_pad >= ow + kw - 1, so wrapped lanes only ever land in cropped columns.
    for i in range(kh):
        win = x_ref[pl.ds(row0 + i, row_tile), :].astype(jnp.float32)
        for j in range(kw):
            shifted = win if j == 0 else pltpu.roll(win, shift=ow_pad - j, axis=1)
            acc = acc + taps[i * kw + j] * shifted

    y_ref[...] = acc.astype(y_ref.dtype)


def conv2d_forward(x, weight, bias, *, row_tile=None):
    """Pallas equivalent of Conv2D.forward: corr2d(x, weight) + bias."""
    H, W = x.shape
    kh, kw = weight.shape
    oh, ow = H - kh + 1, W - kw + 1
    assert oh > 0 and ow > 0, "kernel larger than input"

    itemsize = jnp.dtype(x.dtype).itemsize
    budget = _vmem_budget_bytes()

    # Lane-dense output width, with kw-1 extra lanes of slack for the roll trick.
    ow_pad = _round_up(ow + kw - 1, 128)

    # Row tile: derive from the VMEM budget (2 output buffers + resident input,
    # double-buffered worst case + rounding slop), multiple of 8 sublanes.
    max_useful = _round_up(oh, 8)
    if row_tile is None:
        in_bytes = 2 * (max_useful + kh - 1) * ow_pad * itemsize
        avail = max(budget - in_bytes, 4 * 8 * ow_pad * itemsize)
        row_tile = (avail // (4 * ow_pad * itemsize)) // 8 * 8
        row_tile = max(8, min(row_tile, max_useful, 1024))
        # v7x dual-TC: give the "parallel" axis >= 2 steps to shard when possible
        # (one extra ~0.35us grid step on single-TC chips; up to 2x win on v7x).
        if pl.cdiv(oh, row_tile) < 2 and oh > 8:
            row_tile = _round_up(pl.cdiv(oh, 2), 8)
    else:
        row_tile = min(max(8, _round_up(int(row_tile), 8)), max_useful)

    n_tiles = pl.cdiv(oh, row_tile)
    out_rows = max_useful                   # <= 7 rows of sublane padding
    h_pad = n_tiles * row_tile + kh - 1     # covers halo reads of the last tile

    # Zero-pad once so every (row_tile, ow_pad) window read is in bounds; padded
    # rows/cols never reach the cropped [:oh, :ow] outputs.
    # TODO(synk): the large-map halo-DMA path would remove this full-map pad copy.
    x_pad = jnp.zeros((h_pad, ow_pad), x.dtype).at[:H, :W].set(x)

    w_flat = weight.reshape(-1).astype(jnp.float32)   # 1-D: no 2-D SMEM slab padding
    b_flat = bias.reshape(-1).astype(jnp.float32)

    kernel = functools.partial(
        _conv2d_kernel, kh=kh, kw=kw, row_tile=row_tile, ow_pad=ow_pad
    )
    cost = pl.CostEstimate(
        flops=2 * kh * kw * oh * ow,
        transcendentals=0,
        bytes_accessed=itemsize * (H * W + oh * ow),
    )

    def build(single_buffer_input):
        x_kwargs = (
            {"pipeline_mode": pl.Buffered(buffer_count=1)} if single_buffer_input else {}
        )
        return pl.pallas_call(
            kernel,
            out_shape=jax.ShapeDtypeStruct((out_rows, ow_pad), x.dtype),
            grid=(n_tiles,),
            in_specs=[
                pl.BlockSpec(memory_space=pltpu.MemorySpace.SMEM),   # weight (kh*kw,)
                pl.BlockSpec(memory_space=pltpu.MemorySpace.SMEM),   # bias (1,)
                # Whole map, resident; constant block index -> fetched once.
                pl.BlockSpec((h_pad, ow_pad), lambda r: (0, 0), **x_kwargs),
            ],
            out_specs=pl.BlockSpec((row_tile, ow_pad), lambda r: (r, 0)),
            compiler_params=pltpu.CompilerParams(
                dimension_semantics=("parallel",),   # pipelining + v7x dual-TC sharding
                vmem_limit_bytes=int(budget),
            ),
            cost_estimate=cost,
        )

    try:
        # Single-buffer the never-revolving resident input (halves its VMEM use).
        y_pad = build(True)(w_flat, b_flat, x_pad)
    except Exception:
        # pipeline_mode=pl.Buffered(1) not supported here -> default double buffering.
        y_pad = build(False)(w_flat, b_flat, x_pad)

    if out_rows == oh and ow_pad == ow:
        return y_pad                         # already exact; skip the crop copy
    return y_pad[:oh, :ow]


def corr2d_ref(x, k):
    """Pure-JAX reference mirroring the PyTorch corr2d loop."""
    kh, kw = k.shape
    oh, ow = x.shape[0] - kh + 1, x.shape[1] - kw + 1
    out = jnp.zeros((oh, ow), x.dtype)
    for i in range(kh):
        for j in range(kw):
            out = out + k[i, j] * x[i:i + oh, j:j + ow]
    return out


if __name__ == "__main__":
    key = jax.random.PRNGKey(0)
    k_w, k_b, k_x = jax.random.split(key, 3)

    # Module parameters (Conv2D(kernel_size=(3, 3))): weight ~ randn(3,3), bias ~ randn(1)
    weight = jax.random.normal(k_w, (3, 3), dtype=jnp.float32)
    bias = jax.random.normal(k_b, (1,), dtype=jnp.float32)
    x = jax.random.normal(k_x, (16, 16), dtype=jnp.float32)

    # row_tile=8 forces a 2-step grid at this small size to exercise the tiling
    # (halo reads across the tile boundary, ragged last tile, "parallel" axis).
    y = jax.block_until_ready(conv2d_forward(x, weight, bias, row_tile=8))
    y_ref = corr2d_ref(x, weight) + bias[0]
    assert y.shape == (14, 14), y.shape
    assert jnp.allclose(y, y_ref, atol=1e-5, rtol=1e-5), "mismatch vs reference (3x3)"

    # Textbook example from the spec: K = [[1, -1]] edge detector on X = ones(6, 8).
    k_edge = jnp.array([[1.0, -1.0]], dtype=jnp.float32)
    x_ones = jnp.ones((6, 8), dtype=jnp.float32)
    zero_bias = jnp.zeros((1,), dtype=jnp.float32)
    y_edge = jax.block_until_ready(conv2d_forward(x_ones, k_edge, zero_bias))
    y_edge_ref = corr2d_ref(x_ones, k_edge)
    assert y_edge.shape == (6, 7), y_edge.shape
    assert jnp.allclose(y_edge, y_edge_ref, atol=1e-5, rtol=1e-5), "mismatch vs reference (1x2)"

    print("KERNEL_OK")
</pallas_src>

<mosaic_0001>
module attributes {stable_mosaic.version = 11 : i64} {
  func.func @_conv2d_kernel(%arg0: i32, %arg1: memref<9xf32, #tpu.memory_space<smem>>, %arg2: memref<1xf32, #tpu.memory_space<smem>>, %arg3: memref<18x128xf32, #tpu.memory_space<vmem>>, %arg4: memref<8x128xf32, #tpu.memory_space<vmem>>) attributes {dimension_semantics = [#tpu.dimension_semantics<parallel>], iteration_bounds = array<i64: 2>, scalar_prefetch = 0 : i64, scratch_operands = 0 : i64, tpu.core_type = #tpu.core_type<tc>, window_params = [{transform_indices = @transform_0, window_bounds = array<i64: 9>}, {transform_indices = @transform_1, window_bounds = array<i64: 1>}, {pipeline_mode = #tpu.pipeline_mode<synchronous>, transform_indices = @transform_2, window_bounds = array<i64: 18, 128>}, {transform_indices = @transform_3, window_bounds = array<i64: 8, 128>}]} {
    %c8_i32 = arith.constant 8 : i32
    %0 = arith.muli %arg0, %c8_i32 : i32
    %1 = tpu.assume_multiple %0, 8 : i32
    %c0 = arith.constant 0 : index
    %2 = memref.load %arg1[%c0] : memref<9xf32, #tpu.memory_space<smem>>
    %c1 = arith.constant 1 : index
    %3 = memref.load %arg1[%c1] : memref<9xf32, #tpu.memory_space<smem>>
    %c2 = arith.constant 2 : index
    %4 = memref.load %arg1[%c2] : memref<9xf32, #tpu.memory_space<smem>>
    %c3 = arith.constant 3 : index
    %5 = memref.load %arg1[%c3] : memref<9xf32, #tpu.memory_space<smem>>
    %c4 = arith.constant 4 : index
    %6 = memref.load %arg1[%c4] : memref<9xf32, #tpu.memory_space<smem>>
    %c5 = arith.constant 5 : index
    %7 = memref.load %arg1[%c5] : memref<9xf32, #tpu.memory_space<smem>>
    %c6 = arith.constant 6 : index
    %8 = memref.load %arg1[%c6] : memref<9xf32, #tpu.memory_space<smem>>
    %c7 = arith.constant 7 : index
    %9 = memref.load %arg1[%c7] : memref<9xf32, #tpu.memory_space<smem>>
    %c8 = arith.constant 8 : index
    %10 = memref.load %arg1[%c8] : memref<9xf32, #tpu.memory_space<smem>>
    %c0_0 = arith.constant 0 : index
    %11 = memref.load %arg2[%c0_0] : memref<1xf32, #tpu.memory_space<smem>>
    %12 = vector.broadcast %11 : f32 to vector<8x128xf32>
    %c0_i32 = arith.constant 0 : i32
    %13 = arith.addi %1, %c0_i32 : i32
    %14 = arith.index_cast %13 : i32 to index
    %c0_1 = arith.constant 0 : index
    %15 = vector.load %arg3[%14, %c0_1] : memref<18x128xf32, #tpu.memory_space<vmem>>, vector<8x128xf32>
    %16 = vector.broadcast %2 : f32 to vector<8x128xf32>
    %17 = arith.mulf %16, %15 : vector<8x128xf32>
    %18 = arith.addf %12, %17 : vector<8x128xf32>
    %c127_i32 = arith.constant 127 : i32
    %19 = tpu.dynamic_rotate %15 by %c127_i32 dim 1 : vector<8x128xf32>, i32 -> vector<8x128xf32>
    %20 = vector.broadcast %3 : f32 to vector<8x128xf32>
    %21 = arith.mulf %20, %19 : vector<8x128xf32>
    %22 = arith.addf %18, %21 : vector<8x128xf32>
    %c126_i32 = arith.constant 126 : i32
    %23 = tpu.dynamic_rotate %15 by %c126_i32 dim 1 : vector<8x128xf32>, i32 -> vector<8x128xf32>
    %24 = vector.broadcast %4 : f32 to vector<8x128xf32>
    %25 = arith.mulf %24, %23 : vector<8x128xf32>
    %26 = arith.addf %22, %25 : vector<8x128xf32>
    %c1_i32 = arith.constant 1 : i32
    %27 = arith.addi %1, %c1_i32 : i32
    %28 = arith.index_cast %27 : i32 to index
    %c0_2 = arith.constant 0 : index
    %29 = vector.load %arg3[%28, %c0_2] : memref<18x128xf32, #tpu.memory_space<vmem>>, vector<8x128xf32>
    %30 = vector.broadcast %5 : f32 to vector<8x128xf32>
    %31 = arith.mulf %30, %29 : vector<8x128xf32>
    %32 = arith.addf %26, %31 : vector<8x128xf32>
    %c127_i32_3 = arith.constant 127 : i32
    %33 = tpu.dynamic_rotate %29 by %c127_i32_3 dim 1 : vector<8x128xf32>, i32 -> vector<8x128xf32>
    %34 = vector.broadcast %6 : f32 to vector<8x128xf32>
    %35 = arith.mulf %34, %33 : vector<8x128xf32>
    %36 = arith.addf %32, %35 : vector<8x128xf32>
    %c126_i32_4 = arith.constant 126 : i32
    %37 = tpu.dynamic_rotate %29 by %c126_i32_4 dim 1 : vector<8x128xf32>, i32 -> vector<8x128xf32>
    %38 = vector.broadcast %7 : f32 to vector<8x128xf32>
    %39 = arith.mulf %38, %37 : vector<8x128xf32>
    %40 = arith.addf %36, %39 : vector<8x128xf32>
    %c2_i32 = arith.constant 2 : i32
    %41 = arith.addi %1, %c2_i32 : i32
    %42 = arith.index_cast %41 : i32 to index
    %c0_5 = arith.constant 0 : index
    %43 = vector.load %arg3[%42, %c0_5] : memref<18x128xf32, #tpu.memory_space<vmem>>, vector<8x128xf32>
    %44 = vector.broadcast %8 : f32 to vector<8x128xf32>
    %45 = arith.mulf %44, %43 : vector<8x128xf32>
    %46 = arith.addf %40, %45 : vector<8x128xf32>
    %c127_i32_6 = arith.constant 127 : i32
    %47 = tpu.dynamic_rotate %43 by %c127_i32_6 dim 1 : vector<8x128xf32>, i32 -> vector<8x128xf32>
    %48 = vector.broadcast %9 : f32 to vector<8x128xf32>
    %49 = arith.mulf %48, %47 : vector<8x128xf32>
    %50 = arith.addf %46, %49 : vector<8x128xf32>
    %c126_i32_7 = arith.constant 126 : i32
    %51 = tpu.dynamic_rotate %43 by %c126_i32_7 dim 1 : vector<8x128xf32>, i32 -> vector<8x128xf32>
    %52 = vector.broadcast %10 : f32 to vector<8x128xf32>
    %53 = arith.mulf %52, %51 : vector<8x128xf32>
    %54 = arith.addf %50, %53 : vector<8x128xf32>
    %c0_8 = arith.constant 0 : index
    %c0_9 = arith.constant 0 : index
    %55 = vector.load %arg4[%c0_8, %c0_9] : memref<8x128xf32, #tpu.memory_space<vmem>>, vector<8x128xf32>
    tpu.vector_store %arg4[%c0_8, %c0_9], %54 {strides = array<i32>} : memref<8x128xf32, #tpu.memory_space<vmem>>, vector<8x128xf32>,
    return
  }
  func.func @transform_0(%arg0: i32) -> i32 {
    %c0_i32 = arith.constant 0 : i32
    %c0_i32_0 = arith.constant 0 : i32
    return %c0_i32 : i32
  }
  func.func @transform_1(%arg0: i32) -> i32 {
    %c0_i32 = arith.constant 0 : i32
    %c0_i32_0 = arith.constant 0 : i32
    return %c0_i32 : i32
  }
  func.func @transform_2(%arg0: i32) -> (i32, i32) {
    %c0_i32 = arith.constant 0 : i32
    %c0_i32_0 = arith.constant 0 : i32
    %c0_i32_1 = arith.constant 0 : i32
    return %c0_i32, %c0_i32_0 : i32, i32
  }
  func.func @transform_3(%arg0: i32) -> (i32, i32) {
    %c0_i32 = arith.constant 0 : i32
    %c0_i32_0 = arith.constant 0 : i32
    return %arg0, %c0_i32 : i32, i32
  }
}

module attributes {stable_mosaic.version = 11 : i64} {
  func.func @_conv2d_kernel(%arg0: i32, %arg1: memref<9xf32, #tpu.memory_space<smem>>, %arg2: memref<1xf32, #tpu.memory_space<smem>>, %arg3: memref<18x128xf32, #tpu.memory_space<vmem>>, %arg4: memref<8x128xf32, #tpu.memory_space<vmem>>) attributes {dimension_semantics = [#tpu.dimension_semantics<parallel>], iteration_bounds = array<i64: 2>, scalar_prefetch = 0 : i64, scratch_operands = 0 : i64, tpu.core_type = #tpu.core_type<tc>, window_params = [{transform_indices = @transform_0, window_bounds = array<i64: 9>}, {transform_indices = @transform_1, window_bounds = array<i64: 1>}, {pipeline_mode = #tpu.pipeline_mode<synchronous>, transform_indices = @transform_2, window_bounds = array<i64: 18, 128>}, {transform_indices = @transform_3, window_bounds = array<i64: 8, 128>}]} {
    %c8_i32 = arith.constant 8 : i32
    %0 = arith.muli %arg0, %c8_i32 : i32
    %1 = tpu.assume_multiple %0, 8 : i32
    %c0 = arith.constant 0 : index
    %2 = memref.load %arg1[%c0] : memref<9xf32, #tpu.memory_space<smem>>
    %c1 = arith.constant 1 : index
    %3 = memref.load %arg1[%c1] : memref<9xf32, #tpu.memory_space<smem>>
    %c2 = arith.constant 2 : index
    %4 = memref.load %arg1[%c2] : memref<9xf32, #tpu.memory_space<smem>>
    %c3 = arith.constant 3 : index
    %5 = memref.load %arg1[%c3] : memref<9xf32, #tpu.memory_space<smem>>
    %c4 = arith.constant 4 : index
    %6 = memref.load %arg1[%c4] : memref<9xf32, #tpu.memory_space<smem>>
    %c5 = arith.constant 5 : index
    %7 = memref.load %arg1[%c5] : memref<9xf32, #tpu.memory_space<smem>>
    %c6 = arith.constant 6 : index
    %8 = memref.load %arg1[%c6] : memref<9xf32, #tpu.memory_space<smem>>
    %c7 = arith.constant 7 : index
    %9 = memref.load %arg1[%c7] : memref<9xf32, #tpu.memory_space<smem>>
    %c8 = arith.constant 8 : index
    %10 = memref.load %arg1[%c8] : memref<9xf32, #tpu.memory_space<smem>>
    %c0_0 = arith.constant 0 : index
    %11 = memref.load %arg2[%c0_0] : memref<1xf32, #tpu.memory_space<smem>>
    %12 = vector.broadcast %11 : f32 to vector<8x128xf32>
    %c0_i32 = arith.constant 0 : i32
    %13 = arith.addi %1, %c0_i32 : i32
    %14 = arith.index_cast %13 : i32 to index
    %c0_1 = arith.constant 0 : index
    %15 = vector.load %arg3[%14, %c0_1] : memref<18x128xf32, #tpu.memory_space<vmem>>, vector<8x128xf32>
    %16 = vector.broadcast %2 : f32 to vector<8x128xf32>
    %17 = arith.mulf %16, %15 : vector<8x128xf32>
    %18 = arith.addf %12, %17 : vector<8x128xf32>
    %c127_i32 = arith.constant 127 : i32
    %19 = tpu.dynamic_rotate %15 by %c127_i32 dim 1 : vector<8x128xf32>, i32 -> vector<8x128xf32>
    %20 = vector.broadcast %3 : f32 to vector<8x128xf32>
    %21 = arith.mulf %20, %19 : vector<8x128xf32>
    %22 = arith.addf %18, %21 : vector<8x128xf32>
    %c126_i32 = arith.constant 126 : i32
    %23 = tpu.dynamic_rotate %15 by %c126_i32 dim 1 : vector<8x128xf32>, i32 -> vector<8x128xf32>
    %24 = vector.broadcast %4 : f32 to vector<8x128xf32>
    %25 = arith.mulf %24, %23 : vector<8x128xf32>
    %26 = arith.addf %22, %25 : vector<8x128xf32>
    %c1_i32 = arith.constant 1 : i32
    %27 = arith.addi %1, %c1_i32 : i32
    %28 = arith.index_cast %27 : i32 to index
    %c0_2 = arith.constant 0 : index
    %29 = vector.load %arg3[%28, %c0_2] : memref<18x128xf32, #tpu.memory_space<vmem>>, vector<8x128xf32>
    %30 = vector.broadcast %5 : f32 to vector<8x128xf32>
    %31 = arith.mulf %30, %29 : vector<8x128xf32>
    %32 = arith.addf %26, %31 : vector<8x128xf32>
    %c127_i32_3 = arith.constant 127 : i32
    %33 = tpu.dynamic_rotate %29 by %c127_i32_3 dim 1 : vector<8x128xf32>, i32 -> vector<8x128xf32>
    %34 = vector.broadcast %6 : f32 to vector<8x128xf32>
    %35 = arith.mulf %34, %33 : vector<8x128xf32>
    %36 = arith.addf %32, %35 : vector<8x128xf32>
    %c126_i32_4 = arith.constant 126 : i32
    %37 = tpu.dynamic_rotate %29 by %c126_i32_4 dim 1 : vector<8x128xf32>, i32 -> vector<8x128xf32>
    %38 = vector.broadcast %7 : f32 to vector<8x128xf32>
    %39 = arith.mulf %38, %37 : vector<8x128xf32>
    %40 = arith.addf %36, %39 : vector<8x128xf32>
    %c2_i32 = arith.constant 2 : i32
    %41 = arith.addi %1, %c2_i32 : i32
    %42 = arith.index_cast %41 : i32 to index
    %c0_5 = arith.constant 0 : index
    %43 = vector.load %arg3[%42, %c0_5] : memref<18x128xf32, #tpu.memory_space<vmem>>, vector<8x128xf32>
    %44 = vector.broadcast %8 : f32 to vector<8x128xf32>
    %45 = arith.mulf %44, %43 : vector<8x128xf32>
    %46 = arith.addf %40, %45 : vector<8x128xf32>
    %c127_i32_6 = arith.constant 127 : i32
    %47 = tpu.dynamic_rotate %43 by %c127_i32_6 dim 1 : vector<8x128xf32>, i32 -> vector<8x128xf32>
    %48 = vector.broadcast %9 : f32 to vector<8x128xf32>
    %49 = arith.mulf %48, %47 : vector<8x128xf32>
    %50 = arith.addf %46, %49 : vector<8x128xf32>
    %c126_i32_7 = arith.constant 126 : i32
    %51 = tpu.dynamic_rotate %43 by %c126_i32_7 dim 1 : vector<8x128xf32>, i32 -> vector<8x128xf32>
    %52 = vector.broadcast %10 : f32 to vector<8x128xf32>
    %53 = arith.mulf %52, %51 : vector<8x128xf32>
    %54 = arith.addf %50, %53 : vector<8x128xf32>
    %c0_8 = arith.constant 0 : index
    %c0_9 = arith.constant 0 : index
    %55 = vector.load %arg4[%c0_8, %c0_9] : memref<8x128xf32, #tpu.memory_space<vmem>>, vector<8x128xf32>
    tpu.vector_store %arg4[%c0_8, %c0_9], %54 {strides = array<i32>} : memref<8x128xf32, #tpu.memory_space<vmem>>, vector<8x128xf32>,
    return
  }
  func.func @transform_0(%arg0: i32) -> i32 {
    %c0_i32 = arith.constant 0 : i32
    %c0_i32_0 = arith.constant 0 : i32
    return %c0_i32 : i32
  }
  func.func @transform_1(%arg0: i32) -> i32 {
    %c0_i32 = arith.constant 0 : i32
    %c0_i32_0 = arith.constant 0 : i32
    return %c0_i32 : i32
  }
  func.func @transform_2(%arg0: i32) -> (i32, i32) {
    %c0_i32 = arith.constant 0 : i32
    %c0_i32_0 = arith.constant 0 : i32
    %c0_i32_1 = arith.constant 0 : i32
    return %c0_i32, %c0_i32_0 : i32, i32
  }
  func.func @transform_3(%arg0: i32) -> (i32, i32) {
    %c0_i32 = arith.constant 0 : i32
    %c0_i32_0 = arith.constant 0 : i32
    return %arg0, %c0_i32 : i32, i32
  }
}

</mosaic_0001>

<bundles_post_ra>
// kernel: tpu_custom_call.1
= control target key start
LH: loop header
LB: loop body
LE: loop exit
PB: predicated region body
PF: predicated region fallthrough
CT: control target
= control target key end

     0   :  { %s722_s0 = inlined_call_operand.vmem [shape: f32[9], index: 0, kind: input, shape index: {}]   ;;  %s723_s1 = inlined_call_operand.<no memory space> [shape: f32[1], index: 1, kind: input, shape index: {}]   ;;  %s724_s2 = inlined_call_operand.hbm [shape: f32[18,128], index: 2, kind: input, shape index: {}]   ;;  %s725_s3 = inlined_call_operand.hbm [shape: f32[16,128], index: 3, kind: output, shape index: {}]  }
   0x1   :  { %8 = sst [smem:[#allocation2]] %s723_s1 }
   0x2   :  { %9 = vsyncpa [#allocation6], 0 }
   0x3   :  { %10 = vsyncpa [#allocation4], 0 }
   0x4   :  { %11 = vsyncpa [#allocation5], 0 }
   0x5   :  { %13 = vsyncpa [#allocation5 + $0x1], 0  ;;  %s566_s14 = smov 0   ;;  %s568_s15 = smov 0  }
   0x6   :  { %s570_s16 = smov 0   ;;  %s572_s17 = smov 0  }
   0x7 LB: > { %s587_s1 = sadd.s32 4294967295, %s534_s17   ;;  %s332_s18 = sadd.s32 4294967294, %s534_s17   ;;  %s534_s17 = sphi %s572_s17, %s739_s17   ;;  %s530_s16 = sphi %s570_s16, %s738_s16   ;;  %s526_s15 = sphi %s568_s15, %s737_s15   ;;  %s522_s14 = sphi %s566_s14, %s736_s14  }
   0x8   : > { %s591_s19 = sadd.s32 1, %s534_s17   ;;  %s89_s20 = sadd.s32 1, %s530_s16 }
   0x9   : > { %s86_s21 = ssub.s32 %s534_s17, %s591_s19  ;;  %p99_p0 = scmp.ne.s32.totalorder %s530_s16, %s526_s15 }
   0xa   : > { %p87_p1 = scmp.eq.s32.totalorder %s86_s21, 0  ;;  %p100_p2 = scmp.eq.s32.totalorder %s587_s1, 1 }
   0xb   : > { %p105_p3 = scmp.ne.s32.totalorder %s526_s15, %s522_s14  ;;  %p106_p4 = scmp.eq.s32.totalorder %s332_s18, 1 }
   0xc   : > { %s602_s22 = scalar_select %p87_p1, %s530_s16, %s89_s20  }
   0xd   : > { %p604_p5 = por %p100_p2, %p99_p0  ;;  %p608_p6 = por %p106_p4, %p105_p3 }
   0xe   : > { %p333_p7 = scmp.ge.s32.totalorder %s534_s17, 1  ;;  %p113_p8 = scmp.lt.s32.totalorder %s534_s17, 3 }
   0xf   : > { %s728_s24 = scalar_select %p608_p6, 1, 0 }
  0x10   : > { %p726_p9 = scmp.eq.s32.totalorder %s587_s1, 0  ;;  %p615_p10 = pnand %p333_p7, %p113_p8 }
  0x11   : > { %s126_s28 = sshll.u32 %s722_s0, 4  ;;  %s536_s29 = smov [#allocation7]   ;;  %s127_s28 = int_to_ptr.vmem [resolvable:$true] %s126_s28 }
  0x12   : > { %p367_p11 = pneg %p615_p10  ;;  %s139_s30 = sshll.u32 %s536_s29, 4  ;;  %s630_s30 = int_to_ptr.vmem [resolvable:$true] %s139_s30 }
  0x13   : > { %s421_s5 = scalar_lea.vmem %s127_s28, 16  ;;  %p429_p3 = scmp.lt.s32.totalorder %s127_s28, %s127_s28 }
  0x14   : > { %p626_p12 = pnand %p726_p9, %p367_p11  ;;  %p422_p13 = scmp.ne.s32.totalorder %s127_s28, %s421_s5 }
  0x15   : > { %p430_p4 = scmp.lt.s32.totalorder %s421_s5, %s421_s5 }
  0x16   : > { %p423_p0 = pneg %p626_p12 }
  0x17   : > { %p431_p7 = por %p430_p4, %p429_p3 }
  0x18   : > { %p424_p1 = pnand %p423_p0, %p422_p13 }
  0x1a   : > { %p425_p2 = pneg %p424_p1 }
  0x1c   : > { %p432_p8 = pnand %p431_p7, %p425_p2 }
  0x1e   : > { %435 = shalt.err (!%p432_p8)
}
  0x1f   : > { %s537_s6 = smov [#allocation3]   ;;  %s436_s9 = scalar_lea.hbm %s724_s2, 384 }
  0x20   : > { %370 = dma.vmem_to_smem (!%p626_p12), %s127_s28, 16, %s537_s6, [#allocation6]  }
  0x21   : > { %p437_p11 = scmp.ne.s32.totalorder %s724_s2, %s436_s9  ;;  %p443_p2 = scmp.lt.u32.totalorder %s436_s9, %s724_s2 }
  0x23   : > { %p439_p13 = pnand %p437_p11, %p423_p0 }
  0x25   : > { %p440_p1 = pneg %p439_p13 }
  0x27   : > { %p445_p3 = pnand %p443_p2, %p440_p1 }
  0x29   : > { %448 = shalt.err (!%p445_p3)
}
  0x2a   : > { %s449_s18 = scalar_lea.vmem %s630_s30, 384  ;;  %p457_p9 = scmp.lt.s32.totalorder %s630_s30, %s630_s30 }
  0x2b   : > { %p450_p4 = scmp.ne.s32.totalorder %s630_s30, %s449_s18  ;;  %p458_p11 = scmp.lt.s32.totalorder %s449_s18, %s449_s18 }
  0x2d   : > { %p452_p7 = pnand %p450_p4, %p423_p0  ;;  %p459_p13 = por %p458_p11, %p457_p9 }
  0x2f   : > { %p453_p8 = pneg %p452_p7 }
  0x31   : > { %p460_p6 = pnand %p459_p13, %p453_p8 }
  0x33   : > { %463 = shalt.err (!%p460_p6)
}
  0x34   : > { %s538_s20 = smov 128   ;;  %s539_s21 = smov 8  }
  0x35   : > { %373 = dma.hbm_to_vmem [thread:$0]  (!%p626_p12), %s724_s2, 384, %s630_s30, [#allocation4], %s538_s20, %s538_s20, %s539_s21  }
  0x36   : > { %155 = sbr.rel (%p615_p10) target bundleno = 220 (0xdc), region = 32  ;;  %p731_p0 = scmp.eq.s32.totalorder (!%p615_p10), %s587_s1, 0 }
  0x3d   : > { %509 = dma.done.wait (%p731_p0), [#allocation6], 16   ;;  %p732_p1 = pmov %p731_p0 }
  0x3e   : > { %p733_p6 = pmov %p731_p0 }
  0x3f   : > { %511 = vsyncadd (%p732_p1), [#allocation6], 4294967280 }
  0x40   : > { %513 = dma.done.wait (%p733_p6), [#allocation4], 384   ;;  %p734_p9 = pmov %p731_p0 }
  0x42   : > { %515 = vsyncadd (%p734_p9), [#allocation4], 4294966912 }
  0x43   : > { %165 = sfence }
  0x44   : > { %s340_s28 = sshll.u32 %s587_s1, 3  ;;  %s540_s25 = smov 127  }
  0x45   : > { %s191_s29 = scalar_lea.vmem [#allocation7], %s340_s28  ;;  %s541_s30 = smov 126  }
  0x46   : > { %v192_v0 = vld [vmem:[%s191_s29] sm:$0xff]  ;;  %s180_s4 = sld [smem:[#allocation3]]  ;;  %s341_s5 = sld [smem:[#allocation3 + $0x1]] }
  0x47   : > { %v350_v1 = vld [vmem:[%s191_s29 + $0x1] sm:$0xff]  ;;  %196 = vrot.lane.b32.xlu0 %v192_v0, %s540_s25  ;;  %s189_s6 = sld [smem:[#allocation2]]  ;;  %s343_s7 = sld [smem:[#allocation3 + $0x3]] }
  0x48   : > { %212 = vrot.lane.b32.xlu1 %v350_v1, %s540_s25  ;;  %v352_v2 = vld [vmem:[%s191_s29 + $0x2] sm:$0xff]  ;;  %s342_s8 = sld [smem:[#allocation3 + $0x2]]  ;;  %s344_s9 = sld [smem:[#allocation3 + $0x4]] }
  0x49   : > { %s345_s10 = sld [smem:[#allocation3 + $0x5]]  ;;  %s346_s11 = sld [smem:[#allocation3 + $0x6]] }
  0x4a   : > { %s347_s12 = sld [smem:[#allocation3 + $0x7]]  ;;  %s348_s13 = sld [smem:[#allocation3 + $0x8]] }
  0x4b   : > { %201 = vrot.lane.b32.xlu0 %v192_v0, %s541_s30  ;;  %s176_s18 = sand.u32 1, %s526_s15   ;;  %s354_s21 = sshll.u32 %s587_s1, 7 }
  0x4c   : > { %217 = vrot.lane.b32.xlu1 %v350_v1, %s541_s30  ;;  %v193_v3 = vstv %s180_s4  ;;  %v198_v6 = vstv %s341_s5  ;;  %s339_s20 = sshll.u32 %s176_s18, 3  ;;  %s542_s1 = smov [#allocation8]  }
  0x4d   : > { %v194_v4 = vmul.f32 %v193_v3, %v192_v0  ;;  %v190_v5 = vstv %s189_s6  ;;  %v209_v11 = vstv %s343_s7  ;;  %s178_s26 = scalar_lea.vmem [#allocation8], %s339_s20  ;;  %s468_s5 = sshll.u32 %s542_s1, 4  ;;  %s469_s5 = int_to_ptr.vmem [resolvable:$false] %s468_s5 }
  0x4e   : > { %v203_v12 = vstv %s342_s8  ;;  %v210_v14 = vmul.f32 %v350_v1, %v209_v11  ;;  %v214_v17 = vstv %s344_s9  ;;  %s253_s27 = sshll.u32 %s178_s26, 4  ;;  %s470_s6 = scalar_lea.vmem %s469_s5, 256  ;;  %s682_s27 = int_to_ptr.vmem [resolvable:$true] %s253_s27 }
  0x4f   : > { %228 = vrot.lane.b32.xlu0 %v352_v2, %s540_s25  ;;  %v195_v9 = vadd.f32 %v194_v4, %v190_v5  ;;  %v219_v18 = vstv %s345_s10  ;;  %v225_v21 = vstv %s346_s11  ;;  %s680_s25 = scalar_lea.hbm %s725_s3, %s354_s21  ;;  %s464_s4 = scalar_lea.vmem %s682_s27, 128 }
  0x50   : > { %233 = vrot.lane.b32.xlu1 %v352_v2, %s541_s30  ;;  %v230_v25 = vstv %s347_s12  ;;  %v226_v27 = vmul.f32 %v352_v2, %v225_v21  ;;  %v235_v29 = vstv %s348_s13  ;;  %s240_s30 = scalar_lea.sflag [#allocation5], %s176_s18  ;;  %p465_p10 = scmp.ne.s32.totalorder %s682_s27, %s464_s4 }
  0x51   : > { %p471_p3 = scmp.lt.s32.totalorder %s682_s27, %s469_s5  ;;  %p472_p4 = scmp.lt.s32.totalorder %s470_s6, %s464_s4 }
  0x52   : > { %p466_p12 = pnand %p465_p10, %p604_p5 }
  0x53   : > { %p473_p7 = por %p472_p4, %p471_p3 }
  0x54   : > { %p467_p2 = pneg %p466_p12 }
  0x56   : > { %p474_p8 = pnand %p473_p7, %p467_p2 }
  0xb9   : > { %v197_v7 = vpop.permute.xlu0 %196 }
  0xba   : > { %v213_v8 = vpop.permute.xlu1 %212  ;;  %v199_v10 = vmul.f32 %v198_v6, %v197_v7 }
  0xbb   : > { %v215_v23 = vmul.f32 %v214_v17, %v213_v8 }
  0xbc   : > { %v200_v15 = vadd.f32 %v199_v10, %v195_v9 }
  0xbd   : > { %v202_v13 = vpop.permute.xlu0 %201 }
  0xbe   : > { %v204_v16 = vmul.f32 %v203_v12, %v202_v13  ;;  %v218_v19 = vpop.permute.xlu1 %217 }
  0xbf   : > { %v220_v24 = vmul.f32 %v219_v18, %v218_v19 }
  0xc0   : > { %v205_v20 = vadd.f32 %v204_v16, %v200_v15 }
  0xc1   : > { %v229_v26 = vpop.permute.xlu0 %228 }
  0xc2   : > { %v211_v22 = vadd.f32 %v210_v14, %v205_v20  ;;  %v234_v30 = vpop.permute.xlu1 %233  ;;  %v231_v32 = vmul.f32 %v230_v25, %v229_v26 }
  0xc3   : > { %v236_v34 = vmul.f32 %v235_v29, %v234_v30 }
  0xc4   : > { %v216_v28 = vadd.f32 %v215_v23, %v211_v22 }
  0xc6   : > { %v221_v31 = vadd.f32 %v220_v24, %v216_v28 }
  0xc8   : > { %v227_v33 = vadd.f32 %v226_v27, %v221_v31 }
  0xca   : > { %v232_v35 = vadd.f32 %v231_v32, %v227_v33 }
  0xcc   : > { %v237_v36 = vadd.f32 %v236_v34, %v232_v35 }
  0xce   : > { %238 = vst [vmem:[%s178_s26] sm:$0xff] %v237_v36 }
  0xcf   : > { %477 = shalt.err (!%p474_p8)
}
  0xd0   : > { %s478_s7 = scalar_lea.hbm %s680_s25, 128  ;;  %s482_s10 = scalar_lea.hbm %s725_s3, 256 }
  0xd1   : > { %p479_p11 = scmp.ne.s32.totalorder %s680_s25, %s478_s7  ;;  %p483_p1 = scmp.lt.u32.totalorder %s680_s25, %s725_s3 }
  0xd2   : > { %p484_p6 = scmp.lt.u32.totalorder %s482_s10, %s478_s7  ;;  %p486_p10 = scmp.lt.u32.totalorder %s478_s7, %s680_s25 }
  0xd3   : > { %p480_p13 = pnand %p479_p11, %p604_p5 }
  0xd4   : > { %p485_p9 = por %p484_p6, %p483_p1 }
  0xd5   : > { %p481_p0 = pneg %p480_p13 }
  0xd6   : > { %p487_p12 = por %p486_p10, %p485_p9 }
  0xd8   : > { %p488_p2 = pnand %p487_p12, %p481_p0 }
  0xda   : > { %491 = shalt.err (!%p488_p2)
}
  0xdb   : > { %365 = dma.vmem_to_hbm [thread:$0]  (%p604_p5), %s682_s27, 128, %s680_s25, %s240_s30  }
  0xdc PF: > { %p382_p3 = scmp.ge.s32.totalorder %s534_s17, 2  ;;  %s265_s13 = sand.u32 1, %s522_s14  }
  0xdd   : > { %p735_p4 = scmp.ne.s32.totalorder %s728_s24, 0  ;;  %s266_s18 = scalar_lea.sflag [#allocation5], %s265_s13 }
  0xdf   : > { %p375_p7 = pnand %p382_p3, %p735_p4 }
  0xe1   : > { %517 = dma.done.wait (!%p375_p7), %s266_s18, 128  }
  0xe2   : > { %519 = vsyncadd (!%p375_p7), %s266_s18, 4294967168  ;;  %p16_p8 = scmp.ge.s32.totalorder %s591_s19, 4   ;;  %s736_s14 = smov %s526_s15 }
  0xe3   : > { %s737_s15 = smov %s530_s16  ;;  %s738_s16 = smov %s602_s22 }
  0xe4   : > { %s739_s17 = smov %s591_s19  ;;  %18 = sbr.rel (!%p16_p8) target bundleno = 7 (0x7), region = 77 }
  0xeb   :  { %271 = vsyncpa [#allocation4], 1 }
  0xec   :  { %273 = vsyncpa [#allocation4 + $0x1], 1 }
  0xed   :  { %274 = vsyncpa [#allocation5], 1 }
  0xee   :  { %276 = vsyncpa [#allocation5 + $0x1], 1 }
  0xef   :  { %277 = vsyncpa [#allocation6], 1 }
  0xf0   :  { %279 = vsyncpa [#allocation6 + $0x1], 1 }

// kernel: tpu_custom_call.1
= control target key start
LH: loop header
LB: loop body
LE: loop exit
PB: predicated region body
PF: predicated region fallthrough
CT: control target
= control target key end

     0   :  { %s722_s0 = inlined_call_operand.vmem [shape: f32[9], index: 0, kind: input, shape index: {}]   ;;  %s723_s1 = inlined_call_operand.<no memory space> [shape: f32[1], index: 1, kind: input, shape index: {}]   ;;  %s724_s2 = inlined_call_operand.hbm [shape: f32[18,128], index: 2, kind: input, shape index: {}]   ;;  %s725_s3 = inlined_call_operand.hbm [shape: f32[16,128], index: 3, kind: output, shape index: {}]  }
   0x1   :  { %8 = sst [smem:[#allocation2]] %s723_s1 }
   0x2   :  { %9 = vsyncpa [#allocation6], 0 }
   0x3   :  { %10 = vsyncpa [#allocation4], 0 }
   0x4   :  { %11 = vsyncpa [#allocation5], 0 }
   0x5   :  { %13 = vsyncpa [#allocation5 + $0x1], 0  ;;  %s566_s14 = smov 0   ;;  %s568_s15 = smov 0  }
   0x6   :  { %s570_s16 = smov 0   ;;  %s572_s17 = smov 0  }
   0x7 LB: > { %s587_s1 = sadd.s32 4294967295, %s534_s17   ;;  %s332_s18 = sadd.s32 4294967294, %s534_s17   ;;  %s534_s17 = sphi %s572_s17, %s739_s17   ;;  %s530_s16 = sphi %s570_s16, %s738_s16   ;;  %s526_s15 = sphi %s568_s15, %s737_s15   ;;  %s522_s14 = sphi %s566_s14, %s736_s14  }
   0x8   : > { %s591_s19 = sadd.s32 1, %s534_s17   ;;  %s89_s20 = sadd.s32 1, %s530_s16 }
   0x9   : > { %s86_s21 = ssub.s32 %s534_s17, %s591_s19  ;;  %p99_p0 = scmp.ne.s32.totalorder %s530_s16, %s526_s15 }
   0xa   : > { %p87_p1 = scmp.eq.s32.totalorder %s86_s21, 0  ;;  %p100_p2 = scmp.eq.s32.totalorder %s587_s1, 1 }
   0xb   : > { %p105_p3 = scmp.ne.s32.totalorder %s526_s15, %s522_s14  ;;  %p106_p4 = scmp.eq.s32.totalorder %s332_s18, 1 }
   0xc   : > { %s602_s22 = scalar_select %p87_p1, %s530_s16, %s89_s20  }
   0xd   : > { %p604_p5 = por %p100_p2, %p99_p0  ;;  %p608_p6 = por %p106_p4, %p105_p3 }
   0xe   : > { %p333_p7 = scmp.ge.s32.totalorder %s534_s17, 1  ;;  %p113_p8 = scmp.lt.s32.totalorder %s534_s17, 3 }
   0xf   : > { %s728_s24 = scalar_select %p608_p6, 1, 0 }
  0x10   : > { %p726_p9 = scmp.eq.s32.totalorder %s587_s1, 0  ;;  %p615_p10 = pnand %p333_p7, %p113_p8 }
  0x11   : > { %s126_s28 = sshll.u32 %s722_s0, 4  ;;  %s536_s29 = smov [#allocation7]   ;;  %s127_s28 = int_to_ptr.vmem [resolvable:$true] %s126_s28 }
  0x12   : > { %p367_p11 = pneg %p615_p10  ;;  %s139_s30 = sshll.u32 %s536_s29, 4  ;;  %s630_s30 = int_to_ptr.vmem [resolvable:$true] %s139_s30 }
  0x13   : > { %s421_s5 = scalar_lea.vmem %s127_s28, 16  ;;  %p429_p3 = scmp.lt.s32.totalorder %s127_s28, %s127_s28 }
  0x14   : > { %p626_p12 = pnand %p726_p9, %p367_p11  ;;  %p422_p13 = scmp.ne.s32.totalorder %s127_s28, %s421_s5 }
  0x15   : > { %p430_p4 = scmp.lt.s32.totalorder %s421_s5, %s421_s5 }
  0x16   : > { %p423_p0 = pneg %p626_p12 }
  0x17   : > { %p431_p7 = por %p430_p4, %p429_p3 }
  0x18   : > { %p424_p1 = pnand %p423_p0, %p422_p13 }
  0x1a   : > { %p425_p2 = pneg %p424_p1 }
  0x1c   : > { %p432_p8 = pnand %p431_p7, %p425_p2 }
  0x1e   : > { %435 = shalt.err (!%p432_p8)
}
  0x1f   : > { %s537_s6 = smov [#allocation3]   ;;  %s436_s9 = scalar_lea.hbm %s724_s2, 384 }
  0x20   : > { %370 = dma.vmem_to_smem (!%p626_p12), %s127_s28, 16, %s537_s6, [#allocation6]  }
  0x21   : > { %p437_p11 = scmp.ne.s32.totalorder %s724_s2, %s436_s9  ;;  %p443_p2 = scmp.lt.u32.totalorder %s436_s9, %s724_s2 }
  0x23   : > { %p439_p13 = pnand %p437_p11, %p423_p0 }
  0x25   : > { %p440_p1 = pneg %p439_p13 }
  0x27   : > { %p445_p3 = pnand %p443_p2, %p440_p1 }
  0x29   : > { %448 = shalt.err (!%p445_p3)
}
  0x2a   : > { %s449_s18 = scalar_lea.vmem %s630_s30, 384  ;;  %p457_p9 = scmp.lt.s32.totalorder %s630_s30, %s630_s30 }
  0x2b   : > { %p450_p4 = scmp.ne.s32.totalorder %s630_s30, %s449_s18  ;;  %p458_p11 = scmp.lt.s32.totalorder %s449_s18, %s449_s18 }
  0x2d   : > { %p452_p7 = pnand %p450_p4, %p423_p0  ;;  %p459_p13 = por %p458_p11, %p457_p9 }
  0x2f   : > { %p453_p8 = pneg %p452_p7 }
  0x31   : > { %p460_p6 = pnand %p459_p13, %p453_p8 }
  0x33   : > { %463 = shalt.err (!%p460_p6)
}
  0x34   : > { %s538_s20 = smov 128   ;;  %s539_s21 = smov 8  }
  0x35   : > { %373 = dma.hbm_to_vmem [thread:$0]  (!%p626_p12), %s724_s2, 384, %s630_s30, [#allocation4], %s538_s20, %s538_s20, %s539_s21  }
  0x36   : > { %155 = sbr.rel (%p615_p10) target bundleno = 220 (0xdc), region = 32  ;;  %p731_p0 = scmp.eq.s32.totalorder (!%p615_p10), %s587_s1, 0 }
  0x3d   : > { %509 = dma.done.wait (%p731_p0), [#allocation6], 16   ;;  %p732_p1 = pmov %p731_p0 }
  0x3e   : > { %p733_p6 = pmov %p731_p0 }
  0x3f   : > { %511 = vsyncadd (%p732_p1), [#allocation6], 4294967280 }
  0x40   : > { %513 = dma.done.wait (%p733_p6), [#allocation4], 384   ;;  %p734_p9 = pmov %p731_p0 }
  0x42   : > { %515 = vsyncadd (%p734_p9), [#allocation4], 4294966912 }
  0x43   : > { %165 = sfence }
  0x44   : > { %s340_s28 = sshll.u32 %s587_s1, 3  ;;  %s540_s25 = smov 127  }
  0x45   : > { %s191_s29 = scalar_lea.vmem [#allocation7], %s340_s28  ;;  %s541_s30 = smov 126  }
  0x46   : > { %v192_v0 = vld [vmem:[%s191_s29] sm:$0xff]  ;;  %s180_s4 = sld [smem:[#allocation3]]  ;;  %s341_s5 = sld [smem:[#allocation3 + $0x1]] }
  0x47   : > { %v350_v1 = vld [vmem:[%s191_s29 + $0x1] sm:$0xff]  ;;  %196 = vrot.lane.b32.xlu0 %v192_v0, %s540_s25  ;;  %s189_s6 = sld [smem:[#allocation2]]  ;;  %s343_s7 = sld [smem:[#allocation3 + $0x3]] }
  0x48   : > { %212 = vrot.lane.b32.xlu1 %v350_v1, %s540_s25  ;;  %v352_v2 = vld [vmem:[%s191_s29 + $0x2] sm:$0xff]  ;;  %s342_s8 = sld [smem:[#allocation3 + $0x2]]  ;;  %s344_s9 = sld [smem:[#allocation3 + $0x4]] }
  0x49   : > { %s345_s10 = sld [smem:[#allocation3 + $0x5]]  ;;  %s346_s11 = sld [smem:[#allocation3 + $0x6]] }
  0x4a   : > { %s347_s12 = sld [smem:[#allocation3 + $0x7]]  ;;  %s348_s13 = sld [smem:[#allocation3 + $0x8]] }
  0x4b   : > { %201 = vrot.lane.b32.xlu0 %v192_v0, %s541_s30  ;;  %s176_s18 = sand.u32 1, %s526_s15   ;;  %s354_s21 = sshll.u32 %s587_s1, 7 }
  0x4c   : > { %217 = vrot.lane.b32.xlu1 %v350_v1, %s541_s30  ;;  %v193_v3 = vstv %s180_s4  ;;  %v198_v6 = vstv %s341_s5  ;;  %s339_s20 = sshll.u32 %s176_s18, 3  ;;  %s542_s1 = smov [#allocation8]  }
  0x4d   : > { %v194_v4 = vmul.f32 %v193_v3, %v192_v0  ;;  %v190_v5 = vstv %s189_s6  ;;  %v209_v11 = vstv %s343_s7  ;;  %s178_s26 = scalar_lea.vmem [#allocation8], %s339_s20  ;;  %s468_s5 = sshll.u32 %s542_s1, 4  ;;  %s469_s5 = int_to_ptr.vmem [resolvable:$false] %s468_s5 }
  0x4e   : > { %v203_v12 = vstv %s342_s8  ;;  %v210_v14 = vmul.f32 %v350_v1, %v209_v11  ;;  %v214_v17 = vstv %s344_s9  ;;  %s253_s27 = sshll.u32 %s178_s26, 4  ;;  %s470_s6 = scalar_lea.vmem %s469_s5, 256  ;;  %s682_s27 = int_to_ptr.vmem [resolvable:$true] %s253_s27 }
  0x4f   : > { %228 = vrot.lane.b32.xlu0 %v352_v2, %s540_s25  ;;  %v195_v9 = vadd.f32 %v194_v4, %v190_v5  ;;  %v219_v18 = vstv %s345_s10  ;;  %v225_v21 = vstv %s346_s11  ;;  %s680_s25 = scalar_lea.hbm %s725_s3, %s354_s21  ;;  %s464_s4 = scalar_lea.vmem %s682_s27, 128 }
  0x50   : > { %233 = vrot.lane.b32.xlu1 %v352_v2, %s541_s30  ;;  %v230_v25 = vstv %s347_s12  ;;  %v226_v27 = vmul.f32 %v352_v2, %v225_v21  ;;  %v235_v29 = vstv %s348_s13  ;;  %s240_s30 = scalar_lea.sflag [#allocation5], %s176_s18  ;;  %p465_p10 = scmp.ne.s32.totalorder %s682_s27, %s464_s4 }
  0x51   : > { %p471_p3 = scmp.lt.s32.totalorder %s682_s27, %s469_s5  ;;  %p472_p4 = scmp.lt.s32.totalorder %s470_s6, %s464_s4 }
  0x52   : > { %p466_p12 = pnand %p465_p10, %p604_p5 }
  0x53   : > { %p473_p7 = por %p472_p4, %p471_p3 }
  0x54   : > { %p467_p2 = pneg %p466_p12 }
  0x56   : > { %p474_p8 = pnand %p473_p7, %p467_p2 }
  0xb9   : > { %v197_v7 = vpop.permute.xlu0 %196 }
  0xba   : > { %v213_v8 = vpop.permute.xlu1 %212  ;;  %v199_v10 = vmul.f32 %v198_v6, %v197_v7 }
  0xbb   : > { %v215_v23 = vmul.f32 %v214_v17, %v213_v8 }
  0xbc   : > { %v200_v15 = vadd.f32 %v199_v10, %v195_v9 }
  0xbd   : > { %v202_v13 = vpop.permute.xlu0 %201 }
  0xbe   : > { %v204_v16 = vmul.f32 %v203_v12, %v202_v13  ;;  %v218_v19 = vpop.permute.xlu1 %217 }
  0xbf   : > { %v220_v24 = vmul.f32 %v219_v18, %v218_v19 }
  0xc0   : > { %v205_v20 = vadd.f32 %v204_v16, %v200_v15 }
  0xc1   : > { %v229_v26 = vpop.permute.xlu0 %228 }
  0xc2   : > { %v211_v22 = vadd.f32 %v210_v14, %v205_v20  ;;  %v234_v30 = vpop.permute.xlu1 %233  ;;  %v231_v32 = vmul.f32 %v230_v25, %v229_v26 }
  0xc3   : > { %v236_v34 = vmul.f32 %v235_v29, %v234_v30 }
  0xc4   : > { %v216_v28 = vadd.f32 %v215_v23, %v211_v22 }
  0xc6   : > { %v221_v31 = vadd.f32 %v220_v24, %v216_v28 }
  0xc8   : > { %v227_v33 = vadd.f32 %v226_v27, %v221_v31 }
  0xca   : > { %v232_v35 = vadd.f32 %v231_v32, %v227_v33 }
  0xcc   : > { %v237_v36 = vadd.f32 %v236_v34, %v232_v35 }
  0xce   : > { %238 = vst [vmem:[%s178_s26] sm:$0xff] %v237_v36 }
  0xcf   : > { %477 = shalt.err (!%p474_p8)
}
  0xd0   : > { %s478_s7 = scalar_lea.hbm %s680_s25, 128  ;;  %s482_s10 = scalar_lea.hbm %s725_s3, 256 }
  0xd1   : > { %p479_p11 = scmp.ne.s32.totalorder %s680_s25, %s478_s7  ;;  %p483_p1 = scmp.lt.u32.totalorder %s680_s25, %s725_s3 }
  0xd2   : > { %p484_p6 = scmp.lt.u32.totalorder %s482_s10, %s478_s7  ;;  %p486_p10 = scmp.lt.u32.totalorder %s478_s7, %s680_s25 }
  0xd3   : > { %p480_p13 = pnand %p479_p11, %p604_p5 }
  0xd4   : > { %p485_p9 = por %p484_p6, %p483_p1 }
  0xd5   : > { %p481_p0 = pneg %p480_p13 }
  0xd6   : > { %p487_p12 = por %p486_p10, %p485_p9 }
  0xd8   : > { %p488_p2 = pnand %p487_p12, %p481_p0 }
  0xda   : > { %491 = shalt.err (!%p488_p2)
}
  0xdb   : > { %365 = dma.vmem_to_hbm [thread:$0]  (%p604_p5), %s682_s27, 128, %s680_s25, %s240_s30  }
  0xdc PF: > { %p382_p3 = scmp.ge.s32.totalorder %s534_s17, 2  ;;  %s265_s13 = sand.u32 1, %s522_s14  }
  0xdd   : > { %p735_p4 = scmp.ne.s32.totalorder %s728_s24, 0  ;;  %s266_s18 = scalar_lea.sflag [#allocation5], %s265_s13 }
  0xdf   : > { %p375_p7 = pnand %p382_p3, %p735_p4 }
  0xe1   : > { %517 = dma.done.wait (!%p375_p7), %s266_s18, 128  }
  0xe2   : > { %519 = vsyncadd (!%p375_p7), %s266_s18, 4294967168  ;;  %p16_p8 = scmp.ge.s32.totalorder %s591_s19, 4   ;;  %s736_s14 = smov %s526_s15 }
  0xe3   : > { %s737_s15 = smov %s530_s16  ;;  %s738_s16 = smov %s602_s22 }
  0xe4   : > { %s739_s17 = smov %s591_s19  ;;  %18 = sbr.rel (!%p16_p8) target bundleno = 7 (0x7), region = 77 }
  0xeb   :  { %271 = vsyncpa [#allocation4], 1 }
  0xec   :  { %273 = vsyncpa [#allocation4 + $0x1], 1 }
  0xed   :  { %274 = vsyncpa [#allocation5], 1 }
  0xee   :  { %276 = vsyncpa [#allocation5 + $0x1], 1 }
  0xef   :  { %277 = vsyncpa [#allocation6], 1 }
  0xf0   :  { %279 = vsyncpa [#allocation6 + $0x1], 1 }

</bundles_post_ra>
